<compile_context>
chip_gen: v7x
topology: tpu7x:2x2x1
jax: 0.10.0
libtpu: 0.0.40
codegen_flags: <defaults>
</compile_context>

<pallas_src>
import math
import functools

import jax
import jax.numpy as jnp
import numpy as np
from jax import lax
from jax.experimental import pallas as pl
from jax.experimental.pallas import tpu as pltpu


def _norm_rows(xin, alpha, bias, *, eps):
    """torch Norm: alpha * (x - mean) / (std + eps) + bias, std unbiased (D-1).

    Exact reciprocal on purpose: LayerNorm denominators are more error-sensitive
    than softmax denominators (review), and the cost is negligible.
    """
    d = xin.shape[-1]
    mean = jnp.mean(xin, axis=-1, keepdims=True)
    var = jnp.sum((xin - mean) ** 2, axis=-1, keepdims=True) * (1.0 / (d - 1))
    return alpha * (xin - mean) / (jnp.sqrt(var) + eps) + bias


# --------------------------------------------------------------------------
# kernel 1: norm1 + single fused QKV projection -> q, k, v (B, S, D) lane-dense
# --------------------------------------------------------------------------
def _qkv_kernel(x_ref, a1_ref, g1_ref, wqkv_ref, bqkv_ref,
                q_ref, k_ref, v_ref, *, eps, compute_dtype):
    D = x_ref.shape[-1]
    x = x_ref[0].astype(jnp.float32)                              # (tq, D)
    x2 = _norm_rows(x, a1_ref[...], g1_ref[...], eps=eps)
    # One MXU pass with 3x larger N instead of three matmuls.
    y = jnp.dot(x2.astype(compute_dtype), wqkv_ref[...],
                preferred_element_type=jnp.float32) + bqkv_ref[...]
    y = y.astype(compute_dtype)                                   # (tq, 3D)
    # Whole-slab lane-dense stores (no per-head loop, no masked vst).
    q_ref[0] = y[:, :D]          # already pre-scaled by 1/sqrt(d_k)
    k_ref[0] = y[:, D:2 * D]
    v_ref[0] = y[:, 2 * D:]


# --------------------------------------------------------------------------
# kernel 2: flash attention (online softmax over KV tiles) + out-proj + resid-1
# --------------------------------------------------------------------------
def _attn_kernel(mask_ref, x_ref, q_ref, k_ref, v_ref, wo_ref, bo_ref, o_ref,
                 m_s, l_s, acc_s, *, heads, d_k, approx, exp_dtype, compute_dtype):
    ki = pl.program_id(2)
    nk = pl.num_programs(2)

    @pl.when(ki == 0)
    def _init():
        m_s[...] = jnp.full_like(m_s, -jnp.inf)
        l_s[...] = jnp.zeros_like(l_s)
        acc_s[...] = jnp.zeros_like(acc_s)

    q = q_ref[0]                                                  # (tq, D) lane-dense
    k = k_ref[0]                                                  # (tk, D)
    v = v_ref[0]                                                  # (tk, D)
    keep = mask_ref[0, 0] != 0                                    # (tq, tk), shared by heads

    # Heads via static in-register column slices of the lane-dense tiles; the
    # MXU matmul count / contraction width is identical to a head-batched einsum.
    for h in range(heads):
        sl = slice(h * d_k, (h + 1) * d_k)
        s = lax.dot_general(q[:, sl], k[:, sl],
                            (((1,), (1,)), ((), ())),
                            preferred_element_type=jnp.float32)   # (tq, tk)
        # torch: scores.masked_fill(mask == 0, 1e-9)  (NOT -inf)
        s = jnp.where(keep, s, 1e-09)

        m_prev = m_s[h]                                           # (tq, 1) f32
        m_new = jnp.maximum(m_prev, jnp.max(s, axis=-1, keepdims=True))
        alpha = jnp.exp(m_prev - m_new)                           # tiny: keep f32
        # Big (tq, tk) exp in exp_dtype (bf16 on v6e/v7x bf16 path); stats stay f32.
        p = jnp.exp((s - m_new).astype(exp_dtype))
        l_s[h] = alpha * l_s[h] + jnp.sum(p.astype(jnp.float32), axis=-1, keepdims=True)
        acc_s[h] = alpha * acc_s[h] + jnp.dot(
            p.astype(compute_dtype), v[:, sl], preferred_element_type=jnp.float32)
        m_s[h] = m_new

    @pl.when(ki == nk - 1)
    def _finalize():
        # Fused out-projection + residual-1:
        #   concat @ Wo + bo + x  ==  x + bo + sum_h (acc_h / l_h) @ Wo[h*d_k:(h+1)*d_k, :]
        out = x_ref[0].astype(jnp.float32) + bo_ref[...]
        for h in range(heads):
            inv = pl.reciprocal(l_s[h], approx=True) if approx else 1.0 / l_s[h]
            oh = (acc_s[h] * inv).astype(compute_dtype)           # (tq, d_k)
            out = out + jnp.dot(oh, wo_ref[h * d_k:(h + 1) * d_k, :],
                                preferred_element_type=jnp.float32)
        o_ref[0] = out.astype(o_ref.dtype)


# --------------------------------------------------------------------------
# kernel 3: norm2 + FFN (resident weights, in-kernel d_ff blocking) + residual 2
# --------------------------------------------------------------------------
def _ffn_kernel(xr_ref, a2_ref, g2_ref, w1_ref, c1_ref, w2_ref, c2_ref, o_ref,
                *, ff_block, eps, compute_dtype):
    d_ff = w1_ref.shape[-1]
    nf = d_ff // ff_block                                          # static

    xr = xr_ref[0].astype(jnp.float32)                             # (tq, D) = x + attn
    x2 = _norm_rows(xr, a2_ref[...], g2_ref[...], eps=eps).astype(compute_dtype)
    acc = xr + c2_ref[...]                                         # residual 2 base (f32)

    # TODO(synk): nn.Dropout is identity at inference; no stochastic dropout here.
    # w1/w2 are resident in VMEM (constant index_map); block only the d_ff axis
    # so the (tq, d_ff) hidden activation is never materialised.
    for j in range(nf):
        sl = slice(j * ff_block, (j + 1) * ff_block)
        h1 = jnp.dot(x2, w1_ref[:, sl],
                     preferred_element_type=jnp.float32) + c1_ref[:, sl]
        h1 = jnp.maximum(h1, 0.0).astype(compute_dtype)            # (tq, tf)
        acc = acc + jnp.dot(h1, w2_ref[sl, :], preferred_element_type=jnp.float32)

    o_ref[0] = acc.astype(o_ref.dtype)


# --------------------------------------------------------------------------
# wrapper
# --------------------------------------------------------------------------
def encoder_layer(x, mask, params, heads, *,
                  compute_dtype=jnp.bfloat16,
                  q_block=512, kv_block=512, ff_block=512,
                  eps=1e-6, approx_recip=None, softmax_exp_dtype=None):
    B, S, D = x.shape
    assert D % heads == 0, "d_model must be divisible by heads"
    d_k = D // heads
    d_ff = params["w1"].shape[1]
    cd = jnp.dtype(compute_dtype)
    f32 = jnp.float32
    if approx_recip is None:
        approx_recip = cd != jnp.dtype(f32)
    if softmax_exp_dtype is None:
        # bf16 exp ~doubles EUP throughput on v6e/v7x; exact f32 on the f32 path.
        # TODO(synk): on v5e (no bf16 EUP) pass softmax_exp_dtype=jnp.float32.
        softmax_exp_dtype = cd if cd == jnp.dtype(jnp.bfloat16) else f32
    exp_dtype = jnp.dtype(softmax_exp_dtype)

    # Tile sizes: full dim when small, otherwise fixed tiles (multiples of 8/128).
    tq = S if S <= q_block else q_block
    tk = S if S <= kv_block else kv_block
    tf = d_ff if d_ff <= ff_block else ff_block
    assert S % tq == 0 and S % tk == 0 and d_ff % tf == 0
    nq, nk = S // tq, S // tk

    inv_scale = 1.0 / math.sqrt(d_k)
    # Fuse Q/K/V into one (D, 3D) matmul; fold the softmax scale into wq/bq.
    wqkv = jnp.concatenate(
        [params["wq"] * inv_scale, params["wk"], params["wv"]], axis=1).astype(cd)
    bqkv = jnp.concatenate(
        [params["bq"] * inv_scale, params["bk"], params["bv"]], axis=1).astype(f32)
    wo = params["wo"].astype(cd)
    w1 = params["w1"].astype(cd)
    w2 = params["w2"].astype(cd)
    bo, c1, c2 = (params[n].astype(f32) for n in ("bo", "c1", "c2"))
    a1, g1 = params["a1"].astype(f32), params["g1"].astype(f32)
    a2, g2 = params["a2"].astype(f32), params["g2"].astype(f32)

    # int8 mask: 4x less HBM traffic / VMEM residency than the f32 mask.
    mask_i8 = (mask != 0).astype(jnp.int8)

    isz = cd.itemsize

    def const_spec(shape):
        """Never-changing block: constant index_map + single buffer (no re-DMA,
        no pointless double-buffering -> half the resident footprint on v7x)."""
        idx = lambda *_: (0,) * len(shape)
        try:
            return pl.BlockSpec(shape, idx, pipeline_mode=pl.Buffered(1))
        except (TypeError, AttributeError):   # older jax without pipeline_mode
            return pl.BlockSpec(shape, idx)

    def budget(nbytes):
        # Footprint-derived scoped-VMEM limit (2x margin for padding/internal
        # scratch), floored at the 32 MiB default, capped well under 128 MiB.
        return int(min(max(2 * nbytes + (8 << 20), 32 << 20), 120 << 20))

    def cparams(sem, nbytes):
        return pltpu.CompilerParams(dimension_semantics=sem,
                                    vmem_limit_bytes=budget(nbytes))

    # ----- kernel 1: norm1 + fused QKV projection -----
    k1_bytes = (2 * tq * D * 4                         # x tile (f32) x2 buffers
                + 3 * D * D * isz + 3 * D * 4          # wqkv + bqkv (resident, 1 buf)
                + 4 * D * 4                            # norm params
                + 3 * 2 * tq * D * isz)                # q/k/v output tiles
    qkv_out = pl.BlockSpec((1, tq, D), lambda b, qi: (b, qi, 0))
    qkv_shape = jax.ShapeDtypeStruct((B, S, D), cd)
    q, k, v = pl.pallas_call(
        functools.partial(_qkv_kernel, eps=eps, compute_dtype=cd),
        out_shape=(qkv_shape, qkv_shape, qkv_shape),
        grid=(B, nq),
        in_specs=[pl.BlockSpec((1, tq, D), lambda b, qi: (b, qi, 0)),
                  const_spec((1, D)), const_spec((1, D)),
                  const_spec((D, 3 * D)), const_spec((1, 3 * D))],
        out_specs=(qkv_out, qkv_out, qkv_out),
        compiler_params=cparams(("parallel", "parallel"), k1_bytes),
    )(x, a1, g1, wqkv, bqkv)

    # ----- kernel 2: flash attention + out-projection + residual 1 -----
    k2_bytes = (2 * tq * tk                            # int8 mask tile
                + 2 * tq * D * 4                       # x tile (f32)
                + 2 * tq * D * isz + 4 * tk * D * isz  # q + k/v tiles
                + D * D * isz + D * 4                  # wo + bo (resident, 1 buf)
                + 2 * tq * D * 4                       # output tile (f32)
                + heads * tq * (2 + d_k) * 4)          # m/l/acc scratch
    x_attn = pl.pallas_call(
        functools.partial(_attn_kernel, heads=heads, d_k=d_k, approx=approx_recip,
                          exp_dtype=exp_dtype, compute_dtype=cd),
        out_shape=jax.ShapeDtypeStruct((B, S, D), f32),
        grid=(B, nq, nk),
        in_specs=[pl.BlockSpec((1, 1, tq, tk), lambda b, qi, ki: (b, 0, qi, ki)),  # mask
                  pl.BlockSpec((1, tq, D), lambda b, qi, ki: (b, qi, 0)),          # x
                  pl.BlockSpec((1, tq, D), lambda b, qi, ki: (b, qi, 0)),          # q
                  pl.BlockSpec((1, tk, D), lambda b, qi, ki: (b, ki, 0)),          # k
                  pl.BlockSpec((1, tk, D), lambda b, qi, ki: (b, ki, 0)),          # v
                  const_spec((D, D)), const_spec((1, D))],                         # wo, bo
        out_specs=pl.BlockSpec((1, tq, D), lambda b, qi, ki: (b, qi, 0)),
        scratch_shapes=[pltpu.VMEM((heads, tq, 1), jnp.float32),     # running max
                        pltpu.VMEM((heads, tq, 1), jnp.float32),     # running sum
                        pltpu.VMEM((heads, tq, d_k), jnp.float32)],  # accumulator
        compiler_params=cparams(("parallel", "parallel", "arbitrary"), k2_bytes),
    )(mask_i8, x, q, k, v, wo, bo)

    # ----- kernel 3: norm2 + FFN (resident weights) + residual 2 -----
    k3_bytes = (2 * tq * D * 4                         # x_attn tile (f32)
                + 2 * D * d_ff * isz + d_ff * 4        # w1/w2 + c1 (resident, 1 buf)
                + 6 * D * 4                            # a2/g2/c2
                + 2 * tq * D * 4)                      # output tile
    out = pl.pallas_call(
        functools.partial(_ffn_kernel, ff_block=tf, eps=eps, compute_dtype=cd),
        out_shape=jax.ShapeDtypeStruct((B, S, D), x.dtype),
        grid=(B, nq),
        in_specs=[pl.BlockSpec((1, tq, D), lambda b, qi: (b, qi, 0)),  # x + attn
                  const_spec((1, D)), const_spec((1, D)),              # a2, g2
                  const_spec((D, d_ff)), const_spec((1, d_ff)),        # w1, c1
                  const_spec((d_ff, D)), const_spec((1, D))],          # w2, c2
        out_specs=pl.BlockSpec((1, tq, D), lambda b, qi: (b, qi, 0)),
        compiler_params=cparams(("parallel", "parallel"), k3_bytes),
    )(x_attn, a2, g2, w1, c1, w2, c2)
    return out


# --------------------------------------------------------------------------
# parameters + pure-JAX reference (replicates the PyTorch forward, eval mode)
# --------------------------------------------------------------------------
def make_params(key, d_model, d_ff=2048):
    """nn.Linear / Norm shaped params. Linear weights stored (in, out)."""
    ks = jax.random.split(key, 6)

    def linear(k, din, dout):
        kw, kb = jax.random.split(k)
        bound = 1.0 / math.sqrt(din)
        w = jax.random.uniform(kw, (din, dout), jnp.float32, -bound, bound)
        b = jax.random.uniform(kb, (1, dout), jnp.float32, -bound, bound)
        return w, b

    wq, bq = linear(ks[0], d_model, d_model)
    wk, bk = linear(ks[1], d_model, d_model)
    wv, bv = linear(ks[2], d_model, d_model)
    wo, bo = linear(ks[3], d_model, d_model)
    w1, c1 = linear(ks[4], d_model, d_ff)
    w2, c2 = linear(ks[5], d_ff, d_model)
    a1 = jnp.ones((1, d_model), jnp.float32)
    g1 = jnp.zeros((1, d_model), jnp.float32)
    a2 = jnp.ones((1, d_model), jnp.float32)
    g2 = jnp.zeros((1, d_model), jnp.float32)
    return dict(wq=wq, bq=bq, wk=wk, bk=bk, wv=wv, bv=bv, wo=wo, bo=bo,
                a1=a1, g1=g1, a2=a2, g2=g2, w1=w1, c1=c1, w2=w2, c2=c2)


def ref_encoder_layer(x, mask, p, heads, eps=1e-6):
    B, S, D = x.shape
    d_k = D // heads

    def norm(xin, alpha, bias):
        mean = xin.mean(-1, keepdims=True)
        std = jnp.sqrt(((xin - mean) ** 2).sum(-1, keepdims=True) / (D - 1))
        return alpha * (xin - mean) / (std + eps) + bias

    x2 = norm(x, p["a1"], p["g1"])
    q = x2 @ p["wq"] + p["bq"]
    k = x2 @ p["wk"] + p["bk"]
    v = x2 @ p["wv"] + p["bv"]
    q = q.reshape(B, S, heads, d_k).transpose(0, 2, 1, 3)
    k = k.reshape(B, S, heads, d_k).transpose(0, 2, 1, 3)
    v = v.reshape(B, S, heads, d_k).transpose(0, 2, 1, 3)
    scores = jnp.einsum("bhqd,bhkd->bhqk", q, k) / math.sqrt(d_k)
    scores = jnp.where(mask == 0, 1e-09, scores)
    scores = jax.nn.softmax(scores, axis=-1)
    out = jnp.einsum("bhqk,bhkd->bhqd", scores, v)
    concat = out.transpose(0, 2, 1, 3).reshape(B, S, D)
    x = x + (concat @ p["wo"] + p["bo"])
    x2 = norm(x, p["a2"], p["g2"])
    h1 = jnp.maximum(x2 @ p["w1"] + p["c1"], 0.0)
    x = x + (h1 @ p["w2"] + p["c2"])
    return x


if __name__ == "__main__":
    B, S, D, H = 2, 8, 32, 4
    key = jax.random.PRNGKey(0)
    kx, km, kp = jax.random.split(key, 3)

    x = jax.random.normal(kx, (B, S, D), jnp.float32)
    mask = jax.random.bernoulli(km, 0.9, (B, 1, S, S)).astype(jnp.float32)
    params = make_params(kp, D)          # d_ff defaults to 2048 (FeedForward default)

    ref = ref_encoder_layer(x, mask, params, heads=H)

    # float32 compute path (exact reciprocals, f32 exp): tight check.
    out_f32 = jax.block_until_ready(
        encoder_layer(x, mask, params, H, compute_dtype=jnp.float32))
    np.testing.assert_allclose(np.asarray(out_f32), np.asarray(ref),
                               rtol=2e-3, atol=2e-3)

    # bf16 matmul + bf16 softmax-exp path (default perf config): looser check.
    out_bf16 = jax.block_until_ready(
        encoder_layer(x, mask, params, H, compute_dtype=jnp.bfloat16))
    np.testing.assert_allclose(np.asarray(out_bf16), np.asarray(ref),
                               rtol=5e-2, atol=5e-2)

    print("KERNEL_OK")
</pallas_src>

<mosaic_0001>
module attributes {stable_mosaic.version = 11 : i64} {
  func.func @_qkv_kernel(%arg0: i32, %arg1: i32, %arg2: memref<1x8x32xf32, #tpu.memory_space<vmem>>, %arg3: memref<1x32xf32, #tpu.memory_space<vmem>>, %arg4: memref<1x32xf32, #tpu.memory_space<vmem>>, %arg5: memref<32x96xf32, #tpu.memory_space<vmem>>, %arg6: memref<1x96xf32, #tpu.memory_space<vmem>>, %arg7: memref<1x8x32xf32, #tpu.memory_space<vmem>>, %arg8: memref<1x8x32xf32, #tpu.memory_space<vmem>>, %arg9: memref<1x8x32xf32, #tpu.memory_space<vmem>>) attributes {dimension_semantics = [#tpu.dimension_semantics<parallel>, #tpu.dimension_semantics<parallel>], iteration_bounds = array<i64: 2, 1>, scalar_prefetch = 0 : i64, scratch_operands = 0 : i64, tpu.core_type = #tpu.core_type<tc>, window_params = [{transform_indices = @transform_0, window_bounds = array<i64: 1, 8, 32>}, {pipeline_mode = #tpu.pipeline_mode<synchronous>, transform_indices = @transform_1, window_bounds = array<i64: 1, 32>}, {pipeline_mode = #tpu.pipeline_mode<synchronous>, transform_indices = @transform_2, window_bounds = array<i64: 1, 32>}, {pipeline_mode = #tpu.pipeline_mode<synchronous>, transform_indices = @transform_3, window_bounds = array<i64: 32, 96>}, {pipeline_mode = #tpu.pipeline_mode<synchronous>, transform_indices = @transform_4, window_bounds = array<i64: 1, 96>}, {transform_indices = @transform_5, window_bounds = array<i64: 1, 8, 32>}, {transform_indices = @transform_6, window_bounds = array<i64: 1, 8, 32>}, {transform_indices = @transform_7, window_bounds = array<i64: 1, 8, 32>}]} {
    %c0 = arith.constant 0 : index
    %c0_0 = arith.constant 0 : index
    %c0_1 = arith.constant 0 : index
    %0 = vector.load %arg2[%c0, %c0_0, %c0_1] : memref<1x8x32xf32, #tpu.memory_space<vmem>>, vector<1x8x32xf32>
    %1 = vector.shape_cast %0 : vector<1x8x32xf32> to vector<8x32xf32>
    %c0_2 = arith.constant 0 : index
    %c0_3 = arith.constant 0 : index
    %2 = vector.load %arg3[%c0_2, %c0_3] : memref<1x32xf32, #tpu.memory_space<vmem>>, vector<1x32xf32>
    %c0_4 = arith.constant 0 : index
    %c0_5 = arith.constant 0 : index
    %3 = vector.load %arg4[%c0_4, %c0_5] : memref<1x32xf32, #tpu.memory_space<vmem>>, vector<1x32xf32>
    %cst = arith.constant dense<0.000000e+00> : vector<8xf32>
    %4 = vector.multi_reduction <add>, %1, %cst [1] : vector<8x32xf32> to vector<8xf32>
    %5 = vector.shape_cast %4 : vector<8xf32> to vector<8x1xf32>
    %cst_6 = arith.constant 3.200000e+01 : f32
    %6 = vector.broadcast %cst_6 : f32 to vector<8x1xf32>
    %7 = arith.divf %5, %6 : vector<8x1xf32>
    %8 = vector.broadcast %7 : vector<8x1xf32> to vector<8x32xf32>
    %9 = arith.subf %1, %8 : vector<8x32xf32>
    %10 = arith.mulf %9, %9 : vector<8x32xf32>
    %cst_7 = arith.constant dense<0.000000e+00> : vector<8xf32>
    %11 = vector.multi_reduction <add>, %10, %cst_7 [1] : vector<8x32xf32> to vector<8xf32>
    %12 = vector.shape_cast %11 : vector<8xf32> to vector<8x1xf32>
    %cst_8 = arith.constant 0.0322580636 : f32
    %13 = vector.broadcast %cst_8 : f32 to vector<8x1xf32>
    %14 = arith.mulf %12, %13 : vector<8x1xf32>
    %15 = vector.broadcast %7 : vector<8x1xf32> to vector<8x32xf32>
    %16 = arith.subf %1, %15 : vector<8x32xf32>
    %17 = vector.broadcast %2 : vector<1x32xf32> to vector<8x32xf32>
    %18 = arith.mulf %17, %16 : vector<8x32xf32>
    %19 = math.sqrt %14 : vector<8x1xf32>
    %cst_9 = arith.constant 9.99999997E-7 : f32
    %20 = vector.broadcast %cst_9 : f32 to vector<8x1xf32>
    %21 = arith.addf %19, %20 : vector<8x1xf32>
    %22 = vector.broadcast %21 : vector<8x1xf32> to vector<8x32xf32>
    %23 = arith.divf %18, %22 : vector<8x32xf32>
    %24 = vector.broadcast %3 : vector<1x32xf32> to vector<8x32xf32>
    %25 = arith.addf %23, %24 : vector<8x32xf32>
    %c0_10 = arith.constant 0 : index
    %c0_11 = arith.constant 0 : index
    %26 = vector.load %arg5[%c0_10, %c0_11] : memref<32x96xf32, #tpu.memory_space<vmem>>, vector<32x96xf32>
    %cst_12 = arith.constant dense<0.000000e+00> : vector<8x96xf32>
    %27 = tpu.matmul %25, %26, %cst_12 {dimension_numbers = #tpu.dot_dimension_numbers<[1], [0], [0], [1], [0, 0, 1, 1], [], []>} : vector<8x32xf32>, vector<32x96xf32>, vector<8x96xf32> -> vector<8x96xf32>
    %c0_13 = arith.constant 0 : index
    %c0_14 = arith.constant 0 : index
    %28 = vector.load %arg6[%c0_13, %c0_14] : memref<1x96xf32, #tpu.memory_space<vmem>>, vector<1x96xf32>
    %29 = vector.broadcast %28 : vector<1x96xf32> to vector<8x96xf32>
    %30 = arith.addf %27, %29 : vector<8x96xf32>
    %31 = vector.extract_strided_slice %30 {offsets = [0, 0], sizes = [8, 32], strides = [1, 1]} : vector<8x96xf32> to vector<8x32xf32>
    %c0_15 = arith.constant 0 : index
    %c0_16 = arith.constant 0 : index
    %c0_17 = arith.constant 0 : index
    %32 = vector.load %arg7[%c0_15, %c0_16, %c0_17] : memref<1x8x32xf32, #tpu.memory_space<vmem>>, vector<1x8x32xf32>
    %33 = vector.shape_cast %32 : vector<1x8x32xf32> to vector<8x32xf32>
    %34 = vector.shape_cast %31 : vector<8x32xf32> to vector<1x8x32xf32>
    tpu.vector_store %arg7[%c0_15, %c0_16, %c0_17], %34 {strides = array<i32>} : memref<1x8x32xf32, #tpu.memory_space<vmem>>, vector<1x8x32xf32>,
    %35 = vector.extract_strided_slice %30 {offsets = [0, 32], sizes = [8, 32], strides = [1, 1]} : vector<8x96xf32> to vector<8x32xf32>
    %c0_18 = arith.constant 0 : index
    %c0_19 = arith.constant 0 : index
    %c0_20 = arith.constant 0 : index
    %36 = vector.load %arg8[%c0_18, %c0_19, %c0_20] : memref<1x8x32xf32, #tpu.memory_space<vmem>>, vector<1x8x32xf32>
    %37 = vector.shape_cast %36 : vector<1x8x32xf32> to vector<8x32xf32>
    %38 = vector.shape_cast %35 : vector<8x32xf32> to vector<1x8x32xf32>
    tpu.vector_store %arg8[%c0_18, %c0_19, %c0_20], %38 {strides = array<i32>} : memref<1x8x32xf32, #tpu.memory_space<vmem>>, vector<1x8x32xf32>,
    %39 = vector.extract_strided_slice %30 {offsets = [0, 64], sizes = [8, 32], strides = [1, 1]} : vector<8x96xf32> to vector<8x32xf32>
    %c0_21 = arith.constant 0 : index
    %c0_22 = arith.constant 0 : index
    %c0_23 = arith.constant 0 : index
    %40 = vector.load %arg9[%c0_21, %c0_22, %c0_23] : memref<1x8x32xf32, #tpu.memory_space<vmem>>, vector<1x8x32xf32>
    %41 = vector.shape_cast %40 : vector<1x8x32xf32> to vector<8x32xf32>
    %42 = vector.shape_cast %39 : vector<8x32xf32> to vector<1x8x32xf32>
    tpu.vector_store %arg9[%c0_21, %c0_22, %c0_23], %42 {strides = array<i32>} : memref<1x8x32xf32, #tpu.memory_space<vmem>>, vector<1x8x32xf32>,
    return
  }
  func.func @transform_0(%arg0: i32, %arg1: i32) -> (i32, i32, i32) {
    %c0_i32 = arith.constant 0 : i32
    %c0_i32_0 = arith.constant 0 : i32
    return %arg0, %arg1, %c0_i32 : i32, i32, i32
  }
  func.func @transform_1(%arg0: i32, %arg1: i32) -> (i32, i32) {
    %c0_i32 = arith.constant 0 : i32
    %c0_i32_0 = arith.constant 0 : i32
    %c0_i32_1 = arith.constant 0 : i32
    return %c0_i32, %c0_i32_0 : i32, i32
  }
  func.func @transform_2(%arg0: i32, %arg1: i32) -> (i32, i32) {
    %c0_i32 = arith.constant 0 : i32
    %c0_i32_0 = arith.constant 0 : i32
    %c0_i32_1 = arith.constant 0 : i32
    return %c0_i32, %c0_i32_0 : i32, i32
  }
  func.func @transform_3(%arg0: i32, %arg1: i32) -> (i32, i32) {
    %c0_i32 = arith.constant 0 : i32
    %c0_i32_0 = arith.constant 0 : i32
    %c0_i32_1 = arith.constant 0 : i32
    return %c0_i32, %c0_i32_0 : i32, i32
  }
  func.func @transform_4(%arg0: i32, %arg1: i32) -> (i32, i32) {
    %c0_i32 = arith.constant 0 : i32
    %c0_i32_0 = arith.constant 0 : i32
    %c0_i32_1 = arith.constant 0 : i32
    return %c0_i32, %c0_i32_0 : i32, i32
  }
  func.func @transform_5(%arg0: i32, %arg1: i32) -> (i32, i32, i32) {
    %c0_i32 = arith.constant 0 : i32
    %c0_i32_0 = arith.constant 0 : i32
    return %arg0, %arg1, %c0_i32 : i32, i32, i32
  }
  func.func @transform_6(%arg0: i32, %arg1: i32) -> (i32, i32, i32) {
    %c0_i32 = arith.constant 0 : i32
    %c0_i32_0 = arith.constant 0 : i32
    return %arg0, %arg1, %c0_i32 : i32, i32, i32
  }
  func.func @transform_7(%arg0: i32, %arg1: i32) -> (i32, i32, i32) {
    %c0_i32 = arith.constant 0 : i32
    %c0_i32_0 = arith.constant 0 : i32
    return %arg0, %arg1, %c0_i32 : i32, i32, i32
  }
}

</mosaic_0001>

<bundles_post_ra>
// kernel: tpu_custom_call.1
= control target key start
LH: loop header
LB: loop body
LE: loop exit
PB: predicated region body
PF: predicated region fallthrough
CT: control target
= control target key end

     0   :  { %s1394_s0 = inlined_call_operand.hbm [shape: f32[2,8,32], index: 0, kind: input, shape index: {}]   ;;  %s1395_s1 = inlined_call_operand.vmem [shape: f32[1,32], index: 1, kind: input, shape index: {}]   ;;  %s1396_s2 = inlined_call_operand.vmem [shape: f32[1,32], index: 2, kind: input, shape index: {}]   ;;  %s1397_s3 = inlined_call_operand.hbm [shape: f32[32,96], index: 3, kind: input, shape index: {}]   ;;  %s1398_s4 = inlined_call_operand.vmem [shape: f32[1,96], index: 4, kind: input, shape index: {}]   ;;  %s1399_s5 = inlined_call_operand.hbm [shape: f32[2,8,32], index: 5, kind: output, shape index: {0}]   ;;  %s1400_s6 = inlined_call_operand.hbm [shape: f32[2,8,32], index: 6, kind: output, shape index: {1}]   ;;  %s1401_s7 = inlined_call_operand.hbm [shape: f32[2,8,32], index: 7, kind: output, shape index: {2}]  }
   0x1   :  { %1407 = sst [smem:[#allocation16_spill]] %s1397_s3 }
   0x2   :  { %13 = vsyncpa [#allocation3], 0 }
   0x3   :  { %15 = vsyncpa [#allocation3 + $0x1], 0 }
   0x4   :  { %16 = vsyncpa [#allocation6], 0 }
   0x5   :  { %17 = vsyncpa [#allocation4], 0 }
   0x6   :  { %19 = vsyncpa [#allocation4 + $0x1], 0 }
   0x7   :  { %20 = vsyncpa [#allocation9], 0 }
   0x8   :  { %22 = vsyncpa [#allocation9 + $0x1], 0  ;;  %s1086_s24 = smov 0   ;;  %s1088_s25 = smov 0  }
   0x9   :  { %s1090_s26 = smov 0   ;;  %s1092_s27 = smov 0  }
   0xa   :  { %s1094_s28 = smov 0   ;;  %s1096_s29 = smov 0  }
   0xb LB: > { %s1117_s30 = sadd.s32 4294967295, %s1032_s29   ;;  %s1405_s8 = sadd.s32 4294967294, %s1032_s29   ;;  %s1032_s29 = sphi %s1096_s29, %s28_s29   ;;  %s1028_s28 = sphi %s1094_s28, %s1430_s28   ;;  %s1024_s27 = sphi %s1092_s27, %s1429_s27   ;;  %s1020_s26 = sphi %s1090_s26, %s1428_s26   ;;  %s1016_s25 = sphi %s1088_s25, %s1427_s25   ;;  %s1012_s24 = sphi %s1086_s24, %s1426_s24  }
   0xc   : > { %p62_p0 = scmp.ne.s32.totalorder %s1016_s25, %s1012_s24  ;;  %p1402_p1 = scmp.eq.s32.totalorder %s1117_s30, 0 }
   0xd   : > { %p178_p3 = scmp.eq.s32.totalorder %s1405_s8, 1  ;;  %p689_p5 = scmp.ge.s32.totalorder %s1032_s29, 1 }
   0xe   : > { %p1128_p4 = por %p1402_p1, %p62_p0  ;;  %p241_p7 = scmp.lt.s32.totalorder %s1032_s29, 3 }
   0xf   : > { %p1133_p6 = por %p178_p3, %p62_p0  ;;  %s1034_s12 = smov [#allocation5]  }
  0x10   : > { %s1408_s9 = scalar_select %p1128_p4, 1, 0 }
  0x11   : > { %s1409_s10 = scalar_select %p1133_p6, 1, 0 }
  0x12   : > { %p1138_p8 = pnand %p689_p5, %p241_p7  ;;  %s259_s13 = sshll.u32 %s1034_s12, 4  ;;  %s260_s13 = int_to_ptr.vmem [resolvable:$true] %s259_s13 }
  0x13   : > { %s40_s15 = sadd.s32 1, %s1028_s28  ;;  %s1412_s3 = sld [smem:[#allocation16_spill]] }
  0x14   : > { %s1410_s11 = scalar_select %p1138_p8, 1, 0 }
  0x15   : > { %p746_p9 = pneg %p1138_p8 }
  0x17   : > { %p1147_p11 = pnand %p746_p9, %p1402_p1 }
  0x19   : > { %s828_s18 = scalar_lea.hbm %s1412_s3, 512  ;;  %p830_p13 = pneg %p1147_p11 }
  0x1a   : > { %p829_p12 = scmp.ne.s32.totalorder %s1412_s3, %s828_s18  ;;  %p835_p5 = scmp.lt.u32.totalorder %s828_s18, %s1412_s3 }
  0x1c   : > { %p831_p0 = pnand %p830_p13, %p829_p12 }
  0x1e   : > { %p832_p3 = pneg %p831_p0 }
  0x20   : > { %p837_p7 = pnand %p835_p5, %p832_p3 }
  0x22   : > { %840 = shalt.err (!%p837_p7)
}
  0x23   : > { %s841_s23 = scalar_lea.vmem %s260_s13, 512  ;;  %p849_p2 = scmp.lt.s32.totalorder %s260_s13, %s260_s13 }
  0x24   : > { %p842_p9 = scmp.ne.s32.totalorder %s260_s13, %s841_s23  ;;  %p850_p6 = scmp.lt.s32.totalorder %s841_s23, %s841_s23 }
  0x26   : > { %p844_p10 = pnand %p842_p9, %p830_p13  ;;  %p851_p4 = por %p850_p6, %p849_p2 }
  0x28   : > { %p845_p1 = pneg %p844_p10 }
  0x2a   : > { %p852_p8 = pnand %p851_p4, %p845_p1 }
  0x2c   : > { %855 = shalt.err (!%p852_p8)
}
  0x2d   : > { %s1035_s12 = smov 128   ;;  %s1036_s16 = smov 8  }
  0x2e   : > { %749 = dma.hbm_to_vmem [thread:$0]  (!%p1147_p11), %s1412_s3, 512, %s260_s13, [#allocation6], %s1035_s12, %s1035_s12, %s1036_s16  }
  0x2f   : > { %p42_p1 = scmp.ge.s32.totalorder %s40_s15, 2  ;;  %s49_s19 = sadd.s32 1, %s1020_s26 }
  0x30   : > { %p56_p2 = scmp.ne.s32.totalorder %s1020_s26, %s1016_s25  ;;  %p57_p4 = scmp.eq.s32.totalorder %s1032_s29, 0 }
  0x31   : > { %s1432_s15 = smov (%p42_p1, %s40_s15), 0  ;;  %p1415_p8 = scmp.eq.s32.totalorder %s1117_s30, 1 }
  0x32   : > { %1413 = sst [smem:[#allocation15_spill]] %s1432_s15  ;;  %p1174_p6 = por %p57_p4, %p56_p2 }
  0x33   : > { %p1180_p10 = por %p1415_p8, %p56_p2  ;;  %s44_s14 = ssub.s32 %s1028_s28, %s1432_s15 }
  0x34   : > { %p765_p12 = scmp.lt.s32.totalorder %s1032_s29, 2  ;;  %p47_p11 = scmp.eq.s32.totalorder %s44_s14, 0 }
  0x35   : > { %s276_s13 = sand.u32 1, %s1020_s26   ;;  %s693_s12 = sshll.u32 %s1028_s28, 7 }
  0x36   : > { %s692_s22 = sshll.u32 %s276_s13, 3  ;;  %s1195_s18 = scalar_lea.hbm %s1394_s0, %s693_s12 }
  0x37   : > { %s1189_s23 = scalar_select %p47_p11, %s1020_s26, %s49_s19  }
  0x38   : > { %s280_s8 = scalar_lea.vmem [#allocation2], %s692_s22  ;;  %p1201_p13 = pnand %p765_p12, %p1174_p6 }
  0x39   : > { %s288_s3 = sshll.u32 %s280_s8, 4  ;;  %s277_s19 = scalar_lea.sflag [#allocation3], %s276_s13  ;;  %s1197_s3 = int_to_ptr.vmem [resolvable:$true] %s288_s3 }
  0x3a   : > { %s856_s15 = scalar_lea.hbm %s1195_s18, 128  ;;  %p858_p3 = pneg %p1201_p13 }
  0x3b   : > { %p857_p0 = scmp.ne.s32.totalorder %s1195_s18, %s856_s15  ;;  %s861_s12 = scalar_lea.hbm %s1394_s0, 256 }
  0x3c   : > { %p862_p9 = scmp.lt.u32.totalorder %s1195_s18, %s1394_s0  ;;  %p863_p1 = scmp.lt.u32.totalorder %s861_s12, %s856_s15 }
  0x3d   : > { %p859_p5 = pnand %p858_p3, %p857_p0  ;;  %p865_p4 = scmp.lt.u32.totalorder %s856_s15, %s1195_s18 }
  0x3e   : > { %p864_p2 = por %p863_p1, %p862_p9 }
  0x3f   : > { %p860_p7 = pneg %p859_p5 }
  0x40   : > { %p866_p6 = por %p865_p4, %p864_p2 }
  0x42   : > { %p867_p8 = pnand %p866_p6, %p860_p7 }
  0x44   : > { %870 = shalt.err (!%p867_p8)
}
  0x45   : > { %s871_s13 = scalar_lea.vmem %s1197_s3, 128  ;;  %s1037_s17 = smov [#allocation2]  }
  0x46   : > { %p872_p12 = scmp.ne.s32.totalorder %s1197_s3, %s871_s13  ;;  %s876_s22 = sshll.u32 %s1037_s17, 4  ;;  %s877_s22 = int_to_ptr.vmem [resolvable:$false] %s876_s22 }
  0x47   : > { %s878_s8 = scalar_lea.vmem %s877_s22, 256  ;;  %p879_p5 = scmp.lt.s32.totalorder %s1197_s3, %s877_s22 }
  0x48   : > { %p874_p11 = pnand %p872_p12, %p858_p3  ;;  %p880_p9 = scmp.lt.s32.totalorder %s878_s8, %s871_s13 }
  0x4a   : > { %p875_p0 = pneg %p874_p11  ;;  %p881_p1 = por %p880_p9, %p879_p5 }
  0x4c   : > { %p882_p2 = pnand %p881_p1, %p875_p0 }
  0x4e   : > { %885 = shalt.err (!%p882_p2)
}
  0x4f   : > { %753 = dma.hbm_to_vmem [thread:$0]  (!%p1201_p13), %s1195_s18, 128, %s1197_s3, %s277_s19  }
  0x50   : > { %p1418_p7 = scmp.ne.s32.totalorder %s1410_s11, 0 }
  0x51   : > { %s1233_s15 = sand.u32 (!%p1418_p7), 1, %s1016_s25   ;;  %p1419_p3 = scmp.ne.s32.totalorder (!%p1418_p7), %s1408_s9, 0 }
  0x52   : > { %297 = sbr.rel (%p1418_p7) target bundleno = 786 (0x312), region = 40  ;;  %s1236_s12 = sshll.u32 (!%p1418_p7), %s1233_s15, 3 }
  0x53   : > { %s300_s20 = scalar_lea.sflag (!%p1418_p7), [#allocation3], %s1233_s15  ;;  %s303_s16 = scalar_lea.vmem (!%p1418_p7), [#allocation2], %s1236_s12 }
  0x59   : > { %995 = dma.done.wait (%p1419_p3), %s300_s20, 128  }
  0x5a   : > { %997 = vsyncadd (%p1419_p3), %s300_s20, 4294967168  ;;  %p1420_p13 = scmp.eq.s32.totalorder %s1117_s30, 0 }
  0x5c   : > { %999 = dma.done.wait (%p1420_p13), [#allocation6], 512   ;;  %p1421_p4 = pmov %p1420_p13 }
  0x5d   : > { %vm351_vm0 = vcmask 261120   ;;  %v348_v0 = vld [vmem:[%s303_s16] sm:$0xff]  ;;  %v387_v7 = vld [vmem:[#allocation5] sm:$0xff]  ;;  %v388_v8 = vld [vmem:[#allocation5 + $0x8] sm:$0xff]  ;;  %v1038_v10 = vmov 0.0|0.0   ;;  %vm1039_vm1 = vmmov 0  }
  0x5e   : > { %1001 = vsyncadd (%p1421_p4), [#allocation6], 4294966784  ;;  %v352_v1 = vsel %vm351_vm0, %v348_v0, 0.0  ;;  %v389_v9 = vld [vmem:[#allocation5 + $0x10] sm:$0xff]  ;;  %728 = vmatprep.subr.bf16.mxu0 %v1038_v10  ;;  %v729_v11 = vpack.c.bf16 %v388_v8, %v387_v7  ;;  %v390_v12 = vld [vmem:[#allocation5 + $0x18] sm:$0xff]  ;;  %v1040_v13 = vmov 0.0  }
  0x5f   : > { %353 = vadd.xlane.f32.xlu0 %v352_v1  ;;  %725 = vmatprep.mubr.msk.f32.mxu0 %vm1039_vm1, %v1040_v13  ;;  %v732_v14 = vpack.c.bf16 %v390_v12, %v389_v9  ;;  %v700_v23 = vld [vmem:[%s1395_s1] ss:$0 sm:$0xff]  ;;  %s1261_s13 = sshll.u32 %s1024_s27, 7  ;;  %s333_s17 = scalar_lea.vmem [#allocation7], %s1236_s12 }
  0x60   : > { %730 = vmatpush3.bf16.msra.mxu0 %v729_v11  ;;  %v701_v26 = vld [vmem:[%s1396_s2] ss:$0 sm:$0xff]  ;;  %s506_s22 = sshll.u32 %s333_s17, 4  ;;  %s1268_s16 = scalar_lea.hbm %s1399_s5, %s1261_s13  ;;  %s1270_s22 = int_to_ptr.vmem [resolvable:$true] %s506_s22 }
  0x61   : > { %731 = vmatprep.subr.bf16.mxu0 %v1038_v10  ;;  %v702_v29 = vld [vmem:[%s1398_s4] ss:$0 sm:$0xff]  ;;  %s1041_s3 = smov 96   ;;  %s482_s27 = scalar_lea.sflag [#allocation4], %s1233_s15 }
  0x62   : > { %s886_s9 = scalar_lea.vmem %s1270_s22, 128  ;;  %s1042_s11 = smov [#allocation7]  }
  0x63   : > { %p887_p6 = scmp.ne.s32.totalorder %s1270_s22, %s886_s9  ;;  %s890_s18 = sshll.u32 %s1042_s11, 4  ;;  %s891_s18 = int_to_ptr.vmem [resolvable:$false] %s890_s18 }
  0x64   : > { %733 = vmatpush3.bf16.msra.mxu0 %v732_v14  ;;  %s892_s14 = scalar_lea.vmem %s891_s18, 256  ;;  %p893_p11 = scmp.lt.s32.totalorder %s1270_s22, %s891_s18 }
  0x65   : > { %p888_p8 = pnand %p887_p6, %p1180_p10  ;;  %p894_p0 = scmp.lt.s32.totalorder %s892_s14, %s886_s9 }
  0x67   : > { %p889_p12 = pneg %p888_p8  ;;  %p895_p5 = por %p894_p0, %p893_p11 }
  0x69   : > { %p896_p9 = pnand %p895_p5, %p889_p12 }
  0xec   : > { %v354_v2 = vpop.xlane.xlu0 %353 }
  0xed   : > { %v356_v3 = vmul.f32 0.03125, %v354_v2 }
  0xef   : > { %v357_v4 = vsub.f32 %v348_v0, %v356_v3 }
  0xf1   : > { %v358_v5 = vmul.f32 %v357_v4, %v357_v4  ;;  %v369_v24 = vmul.f32 %v700_v23, %v357_v4 }
  0xf3   : > { %v359_v6 = vsel %vm351_vm0, %v358_v5, 0.0 }
  0xf4   : > { %360 = vadd.xlane.f32.xlu0 %v359_v6 }
 0x181   : > { %v361_v15 = vpop.xlane.xlu0 %360 }
 0x182   : > { %v362_v16 = vmul.f32 0.032258064, %v361_v15 }
 0x184   : > { %824 = vrsqrt.f32 %v362_v16  ;;  %vm372_vm2 = vcmp.eq.f32.partialorder %v362_v16, inf  ;;  %v375_v19 = vand.u32 2147483648, %v362_v16  ;;  %vm374_vm3 = vcmp.eq.f32.partialorder %v362_v16, 0.0 }
 0x18e   : > { %v825_v17 = vpop.eup %824 }
 0x18f   : > { %v371_v18 = vmul.f32 %v825_v17, %v362_v16 }
 0x191   : > { %v373_v20 = vsel %vm372_vm2, %v362_v16, %v371_v18 }
 0x192   : > { %v376_v21 = vsel %vm374_vm3, %v375_v19, %v373_v20 }
 0x193   : > { %v377_v22 = vadd.f32 1e-06, %v376_v21 }
 0x195   : > { %826 = vrcp.f32 %v377_v22 }
 0x19f   : > { %v827_v25 = vpop.eup %826 }
 0x1a0   : > { %v379_v27 = vmul.f32 %v827_v25, %v369_v24 }
 0x1a2   : > { %v386_v28 = vadd.f32 %v701_v26, %v379_v27 }
 0x1a4   : > { %726 = vmatmul.mubr.msk.f32.vlgmr.msra.gmra.mrb[0].mxu0 %vm351_vm0, %v386_v28 }
 0x277   : > { %v467_v30 = vpop.f32.mrb[0].mxu0 }
 0x278   : > { %v468_v31 = vadd.f32 %v702_v29, %v467_v30  ;;  %v727_v32 = vpop.f32.mrb[1].mxu0 }
 0x27a   : > { %473 = vrot.lane.b32.xlu1 %v468_v31, %s1041_s3  ;;  %471 = vst.msk [vmem:[%s333_s17] sm:$0xff] %vm351_vm0, %v468_v31 }
 0x27b   : > { %899 = shalt.err (!%p896_p9)
}
 0x27c   : > { %s900_s15 = scalar_lea.hbm %s1268_s16, 128  ;;  %s904_s8 = scalar_lea.hbm %s1399_s5, 256 }
 0x27d   : > { %p901_p1 = scmp.ne.s32.totalorder %s1268_s16, %s900_s15  ;;  %p905_p3 = scmp.lt.u32.totalorder %s1268_s16, %s1399_s5 }
 0x27e   : > { %p906_p13 = scmp.lt.u32.totalorder %s904_s8, %s900_s15  ;;  %p908_p6 = scmp.lt.u32.totalorder %s900_s15, %s1268_s16 }
 0x27f   : > { %p902_p2 = pnand %p901_p1, %p1180_p10 }
 0x280   : > { %p907_p4 = por %p906_p13, %p905_p3 }
 0x281   : > { %p903_p7 = pneg %p902_p2 }
 0x282   : > { %p909_p8 = por %p908_p6, %p907_p4 }
 0x284   : > { %p910_p12 = pnand %p909_p8, %p903_p7 }
 0x286   : > { %913 = shalt.err (!%p910_p12)
}
 0x287   : > { %740 = dma.vmem_to_hbm [thread:$0]  (%p1180_p10), %s1270_s22, 128, %s1268_s16, %s482_s27  }
 0x288   : > { %s1043_s9 = smov 64   ;;  %s486_s11 = sand.u32 1, %s1117_s30  }
 0x289   : > { %477 = vrot.lane.b32.xlu1 %v468_v31, %s1043_s9  ;;  %s340_s18 = scalar_lea.vmem [#allocation8], %s1236_s12  ;;  %s1301_s17 = scalar_lea.hbm %s1400_s6, %s1261_s13 }
 0x28a   : > { %s520_s14 = sshll.u32 %s340_s18, 4  ;;  %s347_s8 = scalar_lea.vmem [#allocation10], %s1236_s12  ;;  %s1303_s14 = int_to_ptr.vmem [resolvable:$true] %s520_s14 }
 0x28b   : > { %s1308_s20 = sshll.u32 %s347_s8, 4  ;;  %s1311_s30 = scalar_lea.sflag [#allocation9], %s486_s11  ;;  %s1342_s20 = int_to_ptr.vmem [resolvable:$true] %s1308_s20 }
 0x28c   : > { %s914_s22 = scalar_lea.vmem %s1303_s14, 128  ;;  %s1044_s16 = smov [#allocation8]  }
 0x28d   : > { %p915_p11 = scmp.ne.s32.totalorder %s1303_s14, %s914_s22  ;;  %s918_s27 = sshll.u32 %s1044_s16, 4  ;;  %s919_s27 = int_to_ptr.vmem [resolvable:$false] %s918_s27 }
 0x28e   : > { %s920_s3 = scalar_lea.vmem %s919_s27, 256  ;;  %p921_p9 = scmp.lt.s32.totalorder %s1303_s14, %s919_s27 }
 0x28f   : > { %p916_p0 = pnand %p915_p11, %p1180_p10  ;;  %p922_p1 = scmp.lt.s32.totalorder %s920_s3, %s914_s22 }
 0x291   : > { %p917_p5 = pneg %p916_p0  ;;  %p923_p2 = por %p922_p1, %p921_p9 }
 0x293   : > { %p924_p7 = pnand %p923_p2, %p917_p5 }
 0x2ec   : > { %v474_v33 = vpop.permute.xlu1 %473 }
 0x2ed   : > { %476 = vst.msk [vmem:[%s340_s18] sm:$0xff] %vm351_vm0, %v474_v33 }
 0x2ee   : > { %927 = shalt.err (!%p924_p7)
}
 0x2ef   : > { %s928_s9 = scalar_lea.hbm %s1301_s17, 128  ;;  %s932_s15 = scalar_lea.hbm %s1400_s6, 256 }
 0x2f0   : > { %p929_p3 = scmp.ne.s32.totalorder %s1301_s17, %s928_s9  ;;  %p933_p6 = scmp.lt.u32.totalorder %s1301_s17, %s1400_s6 }
 0x2f1   : > { %p934_p8 = scmp.lt.u32.totalorder %s932_s15, %s928_s9  ;;  %p936_p11 = scmp.lt.u32.totalorder %s928_s9, %s1301_s17 }
 0x2f2   : > { %p930_p13 = pnand %p929_p3, %p1180_p10 }
 0x2f3   : > { %p935_p12 = por %p934_p8, %p933_p6 }
 0x2f4   : > { %p931_p4 = pneg %p930_p13 }
 0x2f5   : > { %p937_p0 = por %p936_p11, %p935_p12 }
 0x2f7   : > { %p938_p5 = pnand %p937_p0, %p931_p4 }
 0x2f9   : > { %941 = shalt.err (!%p938_p5)
}
 0x2fa   : > { %741 = dma.vmem_to_hbm [thread:$0]  (%p1180_p10), %s1303_s14, 128, %s1301_s17, %s1311_s30  }
 0x2fb   : > { %s1339_s3 = scalar_lea.hbm %s1401_s7, %s1261_s13  ;;  %v478_v34 = vpop.permute.xlu1 %477  ;;  %s942_s9 = scalar_lea.vmem %s1342_s20, 128 }
 0x2fc   : > { %480 = vst.msk [vmem:[%s347_s8] sm:$0xff] %vm351_vm0, %v478_v34  ;;  %p943_p9 = scmp.ne.s32.totalorder %s1342_s20, %s942_s9  ;;  %s1045_s14 = smov [#allocation10]  }
 0x2fd   : > { %s946_s17 = sshll.u32 %s1045_s14, 4  ;;  %s947_s17 = int_to_ptr.vmem [resolvable:$false] %s946_s17 }
 0x2fe   : > { %p944_p1 = pnand %p943_p9, %p1180_p10  ;;  %s948_s11 = scalar_lea.vmem %s947_s17, 256 }
 0x2ff   : > { %p949_p7 = scmp.lt.s32.totalorder %s1342_s20, %s947_s17  ;;  %p950_p3 = scmp.lt.s32.totalorder %s948_s11, %s942_s9 }
 0x300   : > { %p945_p2 = pneg %p944_p1 }
 0x301   : > { %p951_p13 = por %p950_p3, %p949_p7 }
 0x303   : > { %p952_p4 = pnand %p951_p13, %p945_p2 }
 0x305   : > { %955 = shalt.err (!%p952_p4)
}
 0x306   : > { %s956_s12 = scalar_lea.hbm %s1339_s3, 128  ;;  %s960_s18 = scalar_lea.hbm %s1401_s7, 256 }
 0x307   : > { %p957_p6 = scmp.ne.s32.totalorder %s1339_s3, %s956_s12  ;;  %p961_p11 = scmp.lt.u32.totalorder %s1339_s3, %s1401_s7 }
 0x308   : > { %p962_p0 = scmp.lt.u32.totalorder %s960_s18, %s956_s12  ;;  %p964_p9 = scmp.lt.u32.totalorder %s956_s12, %s1339_s3 }
 0x309   : > { %p958_p8 = pnand %p957_p6, %p1180_p10 }
 0x30a   : > { %p963_p5 = por %p962_p0, %p961_p11 }
 0x30b   : > { %p959_p12 = pneg %p958_p8 }
 0x30c   : > { %p965_p1 = por %p964_p9, %p963_p5 }
 0x30e   : > { %p966_p2 = pnand %p965_p1, %p959_p12 }
 0x310   : > { %969 = shalt.err (!%p966_p2)
}
 0x311   : > { %742 = dma.vmem_to_hbm [thread:$0]  (%p1180_p10), %s1342_s20, 128, %s1339_s3, %s1311_s30  }
 0x312 PF: > { %s546_s16 = sand.u32 1, %s1012_s24   ;;  %p1422_p7 = scmp.ne.s32.totalorder %s1409_s10, 0 }
 0x313   : > { %p1423_p3 = scmp.ge.s32.totalorder %s1032_s29, 2  ;;  %s547_s22 = scalar_lea.sflag [#allocation4], %s546_s16 }
 0x315   : > { %p755_p13 = pnand %p1423_p3, %p1422_p7 }
 0x317   : > { %1003 = dma.done.wait (!%p755_p13), %s547_s22, 128  }
 0x318   : > { %1005 = vsyncadd (!%p755_p13), %s547_s22, 4294967168  ;;  %s1424_s27 = sadd.s32 4294967294, %s1032_s29  }
 0x319   : > { %s555_s9 = sand.u32 1, %s1424_s27  }
 0x31a   : > { %s556_s14 = scalar_lea.sflag [#allocation9], %s555_s9 }
 0x31b   : > { %1007 = dma.done.wait (!%p755_p13), %s556_s14, 256  }
 0x31c   : > { %1009 = vsyncadd (!%p755_p13), %s556_s14, 4294967040  ;;  %s28_s29 = sadd.s32 1, %s1032_s29   ;;  %s1425_s21 = sld [smem:[#allocation15_spill]] }
 0x31d   : > { %p25_p10 = scmp.ge.s32.totalorder %s28_s29, 4   ;;  %s1426_s24 = smov %s1016_s25 }
 0x31e   : > { %s1427_s25 = smov %s1020_s26  ;;  %s1428_s26 = smov %s1189_s23 }
 0x31f   : > { %s1429_s27 = smov %s1028_s28  ;;  %27 = sbr.rel (!%p25_p10) target bundleno = 11 (0xb), region = 121 }
 0x322   : > { %s1430_s28 = smov %s1425_s21 }
 0x326   :  { %570 = vsyncpa [#allocation3], 1 }
 0x327   :  { %572 = vsyncpa [#allocation3 + $0x1], 1 }
 0x328   :  { %573 = vsyncpa [#allocation6], 1 }
 0x329   :  { %574 = vsyncpa [#allocation4], 1 }
 0x32a   :  { %576 = vsyncpa [#allocation4 + $0x1], 1 }
 0x32b   :  { %577 = vsyncpa [#allocation9], 1 }
 0x32c   :  { %579 = vsyncpa [#allocation9 + $0x1], 1 }

</bundles_post_ra>
